<compile_context>
chip_gen: v7x
topology: tpu7x:2x2x1
jax: 0.10.0
libtpu: 0.0.40
codegen_flags: <defaults>
</compile_context>

<pallas_src>
import jax
import jax.numpy as jnp
from jax.experimental import pallas as pl
from jax.experimental.pallas import tpu as pltpu


def _round_up(a, b):
    return (a + b - 1) // b * b


def _pick_tf(F, target):
    """Largest divisor of F <= target (prefer multiples of 128, require mult of 8)."""
    if F <= target:
        return F
    best = None
    for cand in range(target, 7, -1):
        if F % cand == 0:
            if cand % 128 == 0:
                return cand
            if best is None and cand % 8 == 0:
                best = cand
    return best if best is not None else F


def select_moe_tiles(T, H, F, out_itemsize):
    """Generation-specific (tm, tf, vmem_limit) so the weight-bound kernel reaches
    the HBM roofline without blowing the per-generation VMEM budget."""
    kind = ""
    try:
        kind = jax.devices()[0].device_kind.lower()
    except Exception:
        pass
    if "v7" in kind:
        tm_t, tf_t, vmem_cap = 512, 256, 52 * 2**20      # 64 MiB/TC physical
    elif "v6" in kind:
        tm_t, tf_t, vmem_cap = 1024, 1024, 110 * 2**20   # worst TF/s-to-HBM ratio
    elif ("v5e" in kind) or ("v5 lite" in kind) or ("v5litepod" in kind):
        tm_t, tf_t, vmem_cap = 512, 512, 100 * 2**20     # 16 MiB default scoped VMEM
    else:
        tm_t, tf_t, vmem_cap = 512, 256, 56 * 2**20      # conservative fallback

    tm = min(tm_t, _round_up(T, 8))
    tf = _pick_tf(F, tf_t)

    est = (2 * tm * H * 2            # x tile, bf16, double-buffered
           + 2 * H * (2 * tf) * 2    # fused w13 tile x2
           + 2 * tf * H * 2          # w2 tile x2
           + 2 * tm * 4              # routing column
           + 2 * tm * H * out_itemsize
           + tm * H * 4)             # f32 accumulator
    vmem_limit = vmem_cap if est > 16 * 2**20 else None
    return tm, tf, vmem_limit


def fuse_w13(w1t, w3t, tf):
    """Chunk-interleave w1/w3 along the ffn axis: (E,H,F)+(E,H,F) -> (E,H,2F) where
    columns [f*2tf : f*2tf+tf] are w1 chunk f and [f*2tf+tf : (f+1)*2tf] are w3 chunk f."""
    E, H, F = w1t.shape
    nf = F // tf
    w1r = w1t.reshape(E, H, nf, 1, tf)
    w3r = w3t.reshape(E, H, nf, 1, tf)
    return jnp.concatenate([w1r, w3r], axis=3).reshape(E, H, 2 * F)


# -----------------------------------------------------------------------------
# Kernel 1: router logits  (T, H) @ (H, Et_pad) -> (T, Et_pad)   (lane-dense out)
# bf16 operands, f32 accumulation.
# -----------------------------------------------------------------------------
def _gate_kernel(x_ref, wg_ref, o_ref):
    o_ref[...] = jnp.dot(
        x_ref[...], wg_ref[...], preferred_element_type=jnp.float32
    ).astype(o_ref.dtype)


def router_logits_pallas(x, gate_w, *, tm, vmem_limit_bytes=None):
    T, H = x.shape
    Ep = gate_w.shape[1]
    cp = dict(dimension_semantics=("parallel",))
    if vmem_limit_bytes is not None:
        cp["vmem_limit_bytes"] = vmem_limit_bytes
    return pl.pallas_call(
        _gate_kernel,
        out_shape=jax.ShapeDtypeStruct((T, Ep), jnp.float32),
        grid_spec=pltpu.PrefetchScalarGridSpec(
            num_scalar_prefetch=0,
            grid=(T // tm,),
            in_specs=[
                pl.BlockSpec((tm, H), lambda i: (i, 0)),
                pl.BlockSpec((H, Ep), lambda i: (0, 0)),
            ],
            out_specs=pl.BlockSpec((tm, Ep), lambda i: (i, 0)),
        ),
        compiler_params=pltpu.CompilerParams(**cp),
    )(x, gate_w)


# -----------------------------------------------------------------------------
# Kernel 2: weighted expert MLPs accumulated over (expert, ffn-chunk).
#   grid = (token_tiles, E, F//tf); expert and ffn axes are reductions.
#   h13 = x @ [w1_e[:,f] | w3_e[:,f]]           (single fused weight DMA + dot)
#   acc += [(silu(h1) * h3) * w_route] @ w2_e[f,:]
# bf16 matmul operands, f32 gating math, f32 accumulator.
# -----------------------------------------------------------------------------
def _moe_kernel(flags_ref, x_ref, rw_ref, w13_ref, w2_ref, o_ref, acc_ref):
    i = pl.program_id(0)
    e = pl.program_id(1)
    f = pl.program_id(2)

    @pl.when((e == 0) & (f == 0))
    def _():
        acc_ref[...] = jnp.zeros_like(acc_ref)

    # Skip compute when no token in this tile routes to expert e.
    @pl.when(flags_ref[i, e] != 0)
    def _():
        x = x_ref[...]                                                      # (tm, H) bf16
        h13 = jnp.dot(x, w13_ref[0], preferred_element_type=jnp.float32)   # (tm, 2*tf) f32
        tf = h13.shape[-1] // 2
        h1 = h13[:, :tf]
        h3 = h13[:, tf:]
        h = (h1 * jax.nn.sigmoid(h1)) * h3                                  # SiLU gate (f32)
        # Row-wise routing weight scale commutes with the down-projection; -> bf16 for MXU.
        h = (h * rw_ref[0]).astype(w2_ref.dtype)                            # (tm, tf)
        acc_ref[...] += jnp.dot(h, w2_ref[0], preferred_element_type=jnp.float32)

    @pl.when((e == pl.num_programs(1) - 1) & (f == pl.num_programs(2) - 1))
    def _():
        o_ref[...] = acc_ref[...].astype(o_ref.dtype)


def moe_experts_pallas(flags, x, rw, w13t, w2t, *, tm, tf, out_dtype,
                       vmem_limit_bytes=None):
    T, H = x.shape
    E, F, _ = w2t.shape
    cp = dict(dimension_semantics=("parallel", "arbitrary", "arbitrary"))
    if vmem_limit_bytes is not None:
        cp["vmem_limit_bytes"] = vmem_limit_bytes
    return pl.pallas_call(
        _moe_kernel,
        out_shape=jax.ShapeDtypeStruct((T, H), out_dtype),
        grid_spec=pltpu.PrefetchScalarGridSpec(
            num_scalar_prefetch=1,                       # flags -> SMEM
            grid=(T // tm, E, F // tf),
            in_specs=[
                pl.BlockSpec((tm, H), lambda i, e, f, flg: (i, 0)),            # tokens (bf16)
                pl.BlockSpec((1, tm, 1), lambda i, e, f, flg: (e, i, 0)),      # routing col (f32)
                pl.BlockSpec((1, H, 2 * tf), lambda i, e, f, flg: (e, 0, f)),  # fused w1|w3 tile
                pl.BlockSpec((1, tf, H), lambda i, e, f, flg: (e, f, 0)),      # w2 tile
            ],
            out_specs=pl.BlockSpec((tm, H), lambda i, e, f, flg: (i, 0)),
            scratch_shapes=[pltpu.VMEM((tm, H), jnp.float32)],
        ),
        compiler_params=pltpu.CompilerParams(**cp),
    )(flags, x, rw, w13t, w2t)


# -----------------------------------------------------------------------------
# Routing glue (softmax / top-k / renormalization), mirrors the torch module.
# -----------------------------------------------------------------------------
def compute_dense_routing(router_logits, *, top_k, num_experts):
    routing = jax.nn.softmax(router_logits.astype(jnp.float32), axis=1)
    routing_weights, selected_experts = jax.lax.top_k(routing, top_k)
    # TODO(synk): mirrors the torch hardcode (real experts are ids 0..7).
    mask = (selected_experts >= 0) & (selected_experts <= 7)
    maskf = mask.astype(jnp.float32)
    selected = routing_weights * maskf
    s = jnp.sum(selected, axis=-1, keepdims=True)
    s = jnp.where(s == 0.0, 1.0, s)
    routing_weights = selected / s + routing_weights * (1.0 - maskf)
    # Dense (T, E) per-(token, real-expert) weights; null experts (idx >= E) drop out,
    # exactly like the torch loop that only iterates over real experts.
    one_hot = jax.nn.one_hot(selected_experts, num_experts, dtype=jnp.float32)
    dense_w = jnp.einsum("tk,tke->te", routing_weights, one_hot)
    return dense_w


# -----------------------------------------------------------------------------
# Full forward (mirrors CustomMixtralSparseMoeBlock.forward, eval mode)
# -----------------------------------------------------------------------------
def moe_block_forward(hidden_states, params, *, top_k, num_experts, num_null_experts,
                      tm=None, tf=None, vmem_limit_bytes=None):
    B, S, H = hidden_states.shape
    T = B * S
    x = hidden_states.reshape(T, H)
    F = params["w1t"].shape[2]

    tm_auto, tf_auto, vmem_auto = select_moe_tiles(
        T, H, F, jnp.dtype(hidden_states.dtype).itemsize)
    tm_eff = min(tm, _round_up(T, 8)) if tm is not None else tm_auto
    tf_eff = _pick_tf(F, tf) if tf is not None else tf_auto
    if vmem_limit_bytes is None:
        vmem_limit_bytes = vmem_auto

    T_pad = _round_up(T, tm_eff)
    x_pad = jnp.pad(x, ((0, T_pad - T), (0, 0)))
    x_bf = x_pad.astype(jnp.bfloat16)            # single bf16 copy reused by both kernels

    # ---- router logits (bf16 operands, f32 accumulation, lane-padded output) ----
    gate_w = jnp.concatenate([params["gate"], params["gate2"]], axis=1)   # (H, E+En)
    Et = gate_w.shape[1]
    Et_pad = _round_up(Et, 128)
    gate_w_pad = jnp.pad(gate_w, ((0, 0), (0, Et_pad - Et))).astype(jnp.bfloat16)
    logits_pad = router_logits_pallas(x_bf, gate_w_pad, tm=tm_eff,
                                      vmem_limit_bytes=vmem_limit_bytes)
    router_logits = logits_pad[:T, :Et]

    # ---- dense per-token routing weights over real experts ----
    dense_w = compute_dense_routing(router_logits, top_k=top_k, num_experts=num_experts)
    dense_w_pad = jnp.pad(dense_w, ((0, T_pad - T), (0, 0)))              # (T_pad, E)
    # TODO(synk): (E, T_pad, 1) routing column is a narrow lane-sparse DMA; tiny data,
    # low-priority cleanup once weight traffic is fixed (grouped GEMM).
    rw = jnp.transpose(dense_w_pad)[:, :, None]                           # (E, T_pad, 1)

    nt = T_pad // tm_eff
    tile_max = jnp.max(dense_w_pad.reshape(nt, tm_eff, num_experts), axis=1)
    flags = (tile_max > 0.0).astype(jnp.int32)                            # (nt, E)

    # ---- expert MLPs (fused w1|w3, bf16 operands, f32 accumulation) ----
    w13t = fuse_w13(params["w1t"].astype(jnp.bfloat16),
                    params["w3t"].astype(jnp.bfloat16), tf_eff)
    final_pad = moe_experts_pallas(
        flags,
        x_bf,
        rw,
        w13t,
        params["w2t"].astype(jnp.bfloat16),
        tm=tm_eff,
        tf=tf_eff,
        out_dtype=hidden_states.dtype,
        vmem_limit_bytes=vmem_limit_bytes,
    )
    final = final_pad[:T].reshape(B, S, H)
    return final, router_logits


# Pure-JAX reference (same math, f32) for a correctness check.
def moe_experts_ref(x, dense_w, w1t, w3t, w2t):
    out = jnp.zeros_like(x)
    for e in range(w1t.shape[0]):
        h1 = x @ w1t[e]
        h3 = x @ w3t[e]
        y = (jax.nn.silu(h1) * h3) @ w2t[e]
        out = out + dense_w[:, e:e + 1] * y
    return out


if __name__ == "__main__":
    # Small config consistent with the module
    hidden_dim = 32        # config.hidden_size
    ffn_dim = 64           # config.intermediate_size
    num_experts = 8        # config.num_local_experts (matches hardcoded <=7 mask)
    num_null_experts = 2
    top_k = 2              # config.num_experts_per_tok
    B, S = 2, 8

    key = jax.random.PRNGKey(0)
    k_x, k_g, k_g2, k_w1, k_w2, k_w3 = jax.random.split(key, 6)

    hidden_states = jax.random.normal(k_x, (B, S, hidden_dim), dtype=jnp.float32)

    scale = 0.05
    params = {
        # gate weights stored pre-transposed as (in, out)
        "gate": scale * jax.random.normal(k_g, (hidden_dim, num_experts), jnp.float32),
        "gate2": scale * jax.random.normal(k_g2, (hidden_dim, num_null_experts), jnp.float32),
        # expert weights pre-transposed: (E, in, out)
        "w1t": scale * jax.random.normal(k_w1, (num_experts, hidden_dim, ffn_dim), jnp.float32),
        "w3t": scale * jax.random.normal(k_w3, (num_experts, hidden_dim, ffn_dim), jnp.float32),
        "w2t": scale * jax.random.normal(k_w2, (num_experts, ffn_dim, hidden_dim), jnp.float32),
    }

    final, router_logits = moe_block_forward(
        hidden_states,
        params,
        top_k=top_k,
        num_experts=num_experts,
        num_null_experts=num_null_experts,
    )
    jax.block_until_ready((final, router_logits))

    # --- correctness checks ---
    x_flat = hidden_states.reshape(-1, hidden_dim)
    gate_w = jnp.concatenate([params["gate"], params["gate2"]], axis=1)
    # Reference with the same bf16-operand / f32-accumulation contraction.
    logits_ref = jnp.dot(x_flat.astype(jnp.bfloat16), gate_w.astype(jnp.bfloat16),
                         preferred_element_type=jnp.float32)
    assert jnp.allclose(router_logits, logits_ref, atol=2e-3, rtol=2e-3), "router mismatch"

    # Reuse the Pallas logits for routing so expert selection is identical, then
    # compare the expert path (bf16 kernel vs f32 reference, loosened tolerance).
    dense_w_ref = compute_dense_routing(router_logits, top_k=top_k, num_experts=num_experts)
    final_ref = moe_experts_ref(
        x_flat, dense_w_ref, params["w1t"], params["w3t"], params["w2t"]
    )
    assert jnp.allclose(
        final.reshape(-1, hidden_dim), final_ref, atol=5e-3, rtol=5e-2
    ), "expert path mismatch"

    print("KERNEL_OK")
</pallas_src>

<mosaic_0001>
module attributes {stable_mosaic.version = 11 : i64} {
  func.func @_gate_kernel(%arg0: i32, %arg1: memref<16x32xbf16, #tpu.memory_space<vmem>>, %arg2: memref<32x128xbf16, #tpu.memory_space<vmem>>, %arg3: memref<16x128xf32, #tpu.memory_space<vmem>>) attributes {dimension_semantics = [#tpu.dimension_semantics<parallel>], iteration_bounds = array<i64: 1>, scalar_prefetch = 0 : i64, scratch_operands = 0 : i64, tpu.core_type = #tpu.core_type<tc>, window_params = [{transform_indices = @transform_0, window_bounds = array<i64: 16, 32>}, {pipeline_mode = #tpu.pipeline_mode<synchronous>, transform_indices = @transform_1, window_bounds = array<i64: 32, 128>}, {transform_indices = @transform_2, window_bounds = array<i64: 16, 128>}]} {
    %c0 = arith.constant 0 : index
    %c0_0 = arith.constant 0 : index
    %0 = vector.load %arg1[%c0, %c0_0] : memref<16x32xbf16, #tpu.memory_space<vmem>>, vector<16x32xbf16>
    %c0_1 = arith.constant 0 : index
    %c0_2 = arith.constant 0 : index
    %1 = vector.load %arg2[%c0_1, %c0_2] : memref<32x128xbf16, #tpu.memory_space<vmem>>, vector<32x128xbf16>
    %cst = arith.constant dense<0.000000e+00> : vector<16x128xf32>
    %2 = tpu.matmul %0, %1, %cst {dimension_numbers = #tpu.dot_dimension_numbers<[1], [0], [0], [1], [0, 0, 1, 1], [], []>} : vector<16x32xbf16>, vector<32x128xbf16>, vector<16x128xf32> -> vector<16x128xf32>
    %c0_3 = arith.constant 0 : index
    %c0_4 = arith.constant 0 : index
    %3 = vector.load %arg3[%c0_3, %c0_4] : memref<16x128xf32, #tpu.memory_space<vmem>>, vector<16x128xf32>
    tpu.vector_store %arg3[%c0_3, %c0_4], %2 {strides = array<i32>} : memref<16x128xf32, #tpu.memory_space<vmem>>, vector<16x128xf32>,
    return
  }
  func.func @transform_0(%arg0: i32) -> (i32, i32) {
    %c0_i32 = arith.constant 0 : i32
    %c0_i32_0 = arith.constant 0 : i32
    return %arg0, %c0_i32 : i32, i32
  }
  func.func @transform_1(%arg0: i32) -> (i32, i32) {
    %c0_i32 = arith.constant 0 : i32
    %c0_i32_0 = arith.constant 0 : i32
    %c0_i32_1 = arith.constant 0 : i32
    return %c0_i32, %c0_i32_0 : i32, i32
  }
  func.func @transform_2(%arg0: i32) -> (i32, i32) {
    %c0_i32 = arith.constant 0 : i32
    %c0_i32_0 = arith.constant 0 : i32
    return %arg0, %c0_i32 : i32, i32
  }
}

</mosaic_0001>

<bundles_post_ra>
// kernel: tpu_custom_call.1
= control target key start
LH: loop header
LB: loop body
LE: loop exit
PB: predicated region body
PF: predicated region fallthrough
CT: control target
= control target key end

     0   :  { %7 = vsyncpa [#allocation3], 0  ;;  %s288_s0 = inlined_call_operand.hbm [shape: bf16[16,32], index: 0, kind: input, shape index: {}]   ;;  %s289_s1 = inlined_call_operand.hbm [shape: bf16[32,128], index: 1, kind: input, shape index: {}]   ;;  %s290_s2 = inlined_call_operand.hbm [shape: f32[16,128], index: 2, kind: output, shape index: {}]  }
   0x1   :  { %8 = vsyncpa [#allocation6], 0 }
   0x2   :  { %9 = vsyncpa [#allocation4], 0  ;;  %s228_s9 = smov [#allocation2]   ;;  %s156_s13 = scalar_lea.hbm %s288_s0, 128 }
   0x3   :  { %s15_s10 = sshll.u32 %s228_s9, 4  ;;  %p157_p0 = scmp.ne.s32.totalorder %s288_s0, %s156_s13  ;;  %s16_s10 = int_to_ptr.vmem [resolvable:$true] %s15_s10 }
   0x4   :  { %p160_p1 = scmp.lt.u32.totalorder %s156_s13, %s288_s0 }
   0x6   :  { %p162_p2 = pnand %p160_p1, %p157_p0 }
   0x8   :  { %165 = shalt.err (!%p162_p2)
}
   0x9   :  { %s166_s18 = scalar_lea.vmem %s16_s10, 128  ;;  %p171_p4 = scmp.lt.s32.totalorder %s16_s10, %s16_s10 }
   0xa   :  { %p167_p3 = scmp.ne.s32.totalorder %s16_s10, %s166_s18  ;;  %p172_p5 = scmp.lt.s32.totalorder %s166_s18, %s166_s18 }
   0xc   :  { %p173_p6 = por %p172_p5, %p171_p4 }
   0xe   :  { %p174_p7 = pnand %p173_p6, %p167_p3 }
  0x10   :  { %177 = shalt.err (!%p174_p7)
}
  0x11   :  { %s229_s19 = smov 64   ;;  %s230_s20 = smov 4  }
  0x12   :  { %21 = dma.hbm_to_vmem [thread:$0]  %s288_s0, 128, %s16_s10, [#allocation3], %s229_s19, %s229_s19, %s230_s20  }
  0x13   :  { %s231_s23 = smov [#allocation5]   ;;  %s178_s27 = scalar_lea.hbm %s289_s1, 256 }
  0x14   :  { %s27_s24 = sshll.u32 %s231_s23, 4  ;;  %p179_p8 = scmp.ne.s32.totalorder %s289_s1, %s178_s27  ;;  %s28_s24 = int_to_ptr.vmem [resolvable:$true] %s27_s24 }
  0x15   :  { %p182_p9 = scmp.lt.u32.totalorder %s178_s27, %s289_s1 }
  0x17   :  { %p184_p10 = pnand %p182_p9, %p179_p8 }
  0x19   :  { %187 = shalt.err (!%p184_p10)
}
  0x1a   :  { %s188_s4 = scalar_lea.vmem %s28_s24, 256  ;;  %p193_p12 = scmp.lt.s32.totalorder %s28_s24, %s28_s24 }
  0x1b   :  { %p189_p11 = scmp.ne.s32.totalorder %s28_s24, %s188_s4  ;;  %p194_p13 = scmp.lt.s32.totalorder %s188_s4, %s188_s4 }
  0x1d   :  { %p195_p0 = por %p194_p13, %p193_p12 }
  0x1f   :  { %p196_p1 = pnand %p195_p0, %p189_p11 }
  0x21   :  { %199 = shalt.err (!%p196_p1)
}
  0x22   :  { %33 = dma.hbm_to_vmem [thread:$0]  %s289_s1, 256, %s28_s24, [#allocation6], %s229_s19, %s229_s19, %s230_s20  }
  0x23   :  { %222 = dma.done.wait [#allocation3], 128  }
  0x24   :  { %223 = vsyncadd [#allocation3], 4294967168 }
  0x25   :  { %224 = dma.done.wait [#allocation6], 256  }
  0x26   :  { %225 = vsyncadd [#allocation6], 4294967040  ;;  %v232_v0 = vmov 0.0   ;;  %vm233_vm0 = vmmov 0   ;;  %v153_v1 = vld [vmem:[#allocation5] sm:$0xff]   ;;  %v154_v2 = vld [vmem:[#allocation5 + $0x8] sm:$0xff]  }
  0x27   :  { %136 = vmatprep.subr.bf16.mxu0 %v232_v0  ;;  %140 = vmatprep.mubr.msk.bf16.mxu0 %vm233_vm0, %v232_v0  ;;  %v155_v3 = vld [vmem:[#allocation2] sm:$0xff]   ;;  %vm64_vm1 = vcmask 261120   ;;  %s234_s6 = smov [#allocation7]  }
  0x28   :  { %137 = vmatpush3.bf16.msra.mxu0 %v153_v1  ;;  %s116_s7 = sshll.u32 %s234_s6, 4  ;;  %s117_s7 = int_to_ptr.vmem [resolvable:$true] %s116_s7 }
  0x29   :  { %138 = vmatprep.subr.bf16.mxu0 %v232_v0  ;;  %s200_s1 = scalar_lea.vmem %s117_s7, 256  ;;  %p205_p3 = scmp.lt.s32.totalorder %s117_s7, %s117_s7 }
  0x2a   :  { %p201_p2 = scmp.ne.s32.totalorder %s117_s7, %s200_s1  ;;  %p206_p4 = scmp.lt.s32.totalorder %s200_s1, %s200_s1 }
  0x2c   :  { %139 = vmatpush3.bf16.msra.mxu0 %v154_v2  ;;  %p207_p5 = por %p206_p4, %p205_p3 }
  0x2e   :  { %p208_p6 = pnand %p207_p5, %p201_p2 }
  0x2f   :  { %141 = vmatmul.mubr.msk.bf16.vlgmr.msra.gmra.mrb[0].mxu0 %vm64_vm1, %v155_v3 }
 0x102   :  { %v102_v4 = vpop.f32.mrb[0].mxu0 }
 0x103   :  { %109 = vst [vmem:[#allocation7] sm:$0xff] %v102_v4  ;;  %v142_v5 = vpop.f32.mrb[1].mxu0 }
 0x104   :  { %v105_v6 = vpop.f32.mrb[2].mxu0 }
 0x105   :  { %110 = vst [vmem:[#allocation7 + $0x8] sm:$0xff] %v105_v6  ;;  %v143_v7 = vpop.f32.mrb[3].mxu0 }
 0x106   :  { %211 = shalt.err (!%p208_p6)
}
 0x107   :  { %s212_s10 = scalar_lea.hbm %s290_s2, 256 }
 0x108   :  { %p213_p7 = scmp.ne.s32.totalorder %s290_s2, %s212_s10  ;;  %p216_p8 = scmp.lt.u32.totalorder %s212_s10, %s290_s2 }
 0x10a   :  { %p218_p9 = pnand %p216_p8, %p213_p7 }
 0x10c   :  { %221 = shalt.err (!%p218_p9)
}
 0x10d   :  { %s235_s15 = smov 128   ;;  %s236_s16 = smov 8  }
 0x10e   :  { %122 = dma.vmem_to_hbm [thread:$0]  %s117_s7, 256, %s290_s2, [#allocation4], %s235_s15, %s235_s15, %s236_s16  }
 0x10f   :  { %226 = dma.done.wait [#allocation4], 256  }
 0x110   :  { %227 = vsyncadd [#allocation4], 4294967040 }
 0x111   :  { %126 = vsyncpa [#allocation3], 1 }
 0x112   :  { %127 = vsyncpa [#allocation6], 1 }
 0x113   :  { %128 = vsyncpa [#allocation4], 1 }

</bundles_post_ra>
